<compile_context>
chip_gen: v7x
topology: tpu7x:2x2x1
jax: 0.10.0
libtpu: 0.0.40
codegen_flags: <defaults>
</compile_context>

<pallas_src>
import functools

import jax
import jax.numpy as jnp
from jax import lax
from jax.experimental import pallas as pl
from jax.experimental.pallas import tpu as pltpu


# -----------------------------------------------------------------------------
# Kernel
# -----------------------------------------------------------------------------
def net_kernel(*refs, n_hidden, pool_size, batch, time):
    """Whole forward pass for one (small) problem instance, fully in VMEM.

    refs = [x, (W0, b0), ..., (W_{n_hidden-1}, b_{n_hidden-1}), W_last,
            pvec(5,D), am(SMEM (1,2)), logits_out, h_out]
    pvec rows: 0=gamma, 1=beta, 2=wk0, 3=wk1, 4=wb.
    Rows of x / h are time-major: row r = t*batch + b.
    """
    f32 = jnp.float32
    in_refs = refs[:-2]
    logits_ref, h_out_ref = refs[-2:]

    x_ref = in_refs[0]
    h = x_ref[...].astype(f32)                              # (N, D_in)

    # ---- MLP: Linear + Maxout (hidden layers), Linear (last, no bias) ----
    idx = 1
    for _ in range(n_hidden):
        w_ref, b_ref = in_refs[idx], in_refs[idx + 1]
        idx += 2
        # NOTE: cast operands to bf16 (keep f32 accumulate) once widths scale.
        h = jnp.dot(h, w_ref[...], preferred_element_type=f32) + b_ref[...]
        # Maxout: columns were pre-permuted so pool partners live in contiguous
        # blocks of size c = out // pool_size.
        c = h.shape[1] // pool_size
        mx = h[:, :c]
        for p in range(1, pool_size):
            mx = jnp.maximum(mx, h[:, p * c:(p + 1) * c])
        h = mx

    w_last_ref = in_refs[idx]
    idx += 1
    h = jnp.dot(h, w_last_ref[...], preferred_element_type=f32)   # (N, D)

    pvec_ref, am_ref = in_refs[idx:]
    gamma = pvec_ref[0:1, :]
    beta = pvec_ref[1:2, :]
    wk0 = pvec_ref[2:3, :]
    wk1 = pvec_ref[3:4, :]
    wb = pvec_ref[4:5, :]

    # ---- BatchNorm1d (training mode, biased stats), single pass over h ----
    inv_n = 1.0 / float(batch * time)
    mean = jnp.sum(h, axis=0, keepdims=True) * inv_n
    var = jnp.sum(h * h, axis=0, keepdims=True) * inv_n - mean * mean
    hn = (h - mean) * lax.rsqrt(var + 1e-5) * gamma + beta
    h_out_ref[...] = hn.astype(h_out_ref.dtype)

    B = batch
    # ---- grouped Conv1d(kernel=2, groups=dim) along time, |.|, batch sums ----
    # Time-major rows: successor in time of row r is row r + B, and the rows
    # that have a successor (t < time-1) are exactly the first (time-1)*B rows.
    hn_lo = hn[:(time - 1) * B, :]                      # h[:, t,   :]
    hn_hi = hn[B:, :]                                   # h[:, t+1, :]
    abs_diff = jnp.abs(wk0 * hn_lo + wk1 * hn_hi + wb)

    q_bd = abs_diff[:B, :]                              # (B, D) per-batch/dim
    for s in range(1, time - 1):
        q_bd = q_bd + abs_diff[s * B:(s + 1) * B, :]

    hn0 = hn[:B, :]                                     # t = 0 rows
    contrib = am_ref[0, 0] * (hn0 * hn0) - q_bd         # a*h0^2 - |conv|

    # logits[b] = m + sum_d contrib[b, d]; emit lane-dense as (1, B) by
    # contracting a (1, D) ones row against dim 1 of contrib (B, D).
    ones_row = jnp.ones((1, contrib.shape[1]), f32)
    logits = lax.dot_general(ones_row, contrib, (((1,), (1,)), ((), ())),
                             preferred_element_type=f32) + am_ref[0, 1]
    logits_ref[...] = logits.astype(logits_ref.dtype)


# -----------------------------------------------------------------------------
# Wrapper (glue: reshapes, weight layout, pallas_call plumbing)
# -----------------------------------------------------------------------------
def _permute_maxout_cols(W, b, pool_size):
    """Reorder output columns so maxout partners form contiguous halves."""
    out = W.shape[1]
    perm = jnp.concatenate(
        [jnp.arange(p, out, pool_size) for p in range(pool_size)])
    return W[:, perm], b[perm]


def net_forward(x, params, pool_size=2):
    B, T, D = x.shape
    N = B * T
    # Time-major row layout: row r = t*B + b (see kernel header).
    x2 = jnp.transpose(x, (1, 0, 2)).reshape(N, D).astype(jnp.float32)

    Ws, bs = params["Ws"], params["bs"]
    n_hidden = len(bs)

    ins = [x2]
    for k in range(n_hidden):
        Wp, bp = _permute_maxout_cols(Ws[k], bs[k], pool_size)
        ins += [Wp, bp.reshape(1, -1)]
    ins.append(Ws[-1])                                   # last layer, no bias
    # Pack the five per-dim parameter rows into one (5, D) VMEM slab.
    pvec = jnp.stack([
        params["gamma"], params["beta"],
        params["wk"][:, 0], params["wk"][:, 1], params["wb"],
    ], axis=0).astype(jnp.float32)                       # (5, D)
    ins.append(pvec)
    ins.append(jnp.concatenate([params["a"], params["m"]]).reshape(1, 2)
               .astype(jnp.float32))                     # [a, m] -> one SMEM arg

    n_vmem = len(ins) - 1                                # am goes to SMEM
    in_specs = [pl.BlockSpec(a.shape, lambda i: (0, 0)) for a in ins[:n_vmem]]
    in_specs += [pl.BlockSpec(memory_space=pltpu.MemorySpace.SMEM)]

    kernel = functools.partial(
        net_kernel, n_hidden=n_hidden, pool_size=pool_size, batch=B, time=T)

    # Whole problem resident in VMEM (tiny). For large N, tile rows over a
    # "parallel" grid axis and use a two-pass BatchNorm instead.
    logits, h = pl.pallas_call(
        kernel,
        grid=(1,),
        in_specs=in_specs,
        out_specs=[pl.BlockSpec((1, B), lambda i: (0, 0)),
                   pl.BlockSpec((N, D), lambda i: (0, 0))],
        out_shape=[jax.ShapeDtypeStruct((1, B), jnp.float32),
                   jax.ShapeDtypeStruct((N, D), jnp.float32)],
        compiler_params=pltpu.CompilerParams(
            dimension_semantics=("arbitrary",)),
    )(*ins)

    # Undo the time-major layout for the h output; squeeze lane-dense logits.
    return logits[0], jnp.transpose(h.reshape(T, B, D), (1, 0, 2))


# -----------------------------------------------------------------------------
# Deterministic parameter init (mirrors the shapes created in Net.__init__)
# -----------------------------------------------------------------------------
def init_params(key, num_dim, h_sizes, pool_size=2):
    h_aug = [num_dim] + h_sizes
    keys = jax.random.split(key, 2 * len(h_aug) + 4)

    def xavier(k, fan_in, fan_out):
        limit = (6.0 / (fan_in + fan_out)) ** 0.5
        return jax.random.uniform(k, (fan_in, fan_out), jnp.float32,
                                  -limit, limit)

    Ws, bs = [], []
    ki = 0
    for k in range(1, len(h_aug) - 1):                 # hidden: Linear(+bias)
        fan_in, fan_out = h_aug[k - 1], h_aug[k] * pool_size
        Ws.append(xavier(keys[ki], fan_in, fan_out)); ki += 1
        bound = 1.0 / (fan_in ** 0.5)
        bs.append(jax.random.uniform(keys[ki], (fan_out,), jnp.float32,
                                     -bound, bound)); ki += 1
    Ws.append(xavier(keys[ki], h_aug[-2], h_aug[-1])); ki += 1   # last, no bias

    # Conv1d(num_dim, num_dim, kernel_size=2, groups=num_dim):
    # weight[:, :, 0] = 1, weight[:, :, 1] = -1 (as in Net.__init__), bias random.
    wk = jnp.stack([jnp.ones((num_dim,), jnp.float32),
                    -jnp.ones((num_dim,), jnp.float32)], axis=1)     # (D, 2)
    wb = jax.random.uniform(keys[ki], (num_dim,), jnp.float32,
                            -1.0 / (2.0 ** 0.5), 1.0 / (2.0 ** 0.5)); ki += 1

    return {
        "Ws": Ws, "bs": bs,
        "gamma": jnp.ones((num_dim,), jnp.float32),     # BatchNorm1d weight
        "beta": jnp.zeros((num_dim,), jnp.float32),     # BatchNorm1d bias
        "wk": wk, "wb": wb,
        "a": jnp.ones((1,), jnp.float32),
        "m": jnp.zeros((1,), jnp.float32),
    }


# -----------------------------------------------------------------------------
# Pure-JAX reference (mirrors the PyTorch forward exactly) for verification
# -----------------------------------------------------------------------------
def net_forward_ref(x, params, pool_size=2):
    B, T, D = x.shape
    Ws, bs = params["Ws"], params["bs"]
    h = x.reshape(-1, D)
    for k in range(len(bs)):
        h = h @ Ws[k] + bs[k]
        h = h.reshape(h.shape[0], -1, pool_size).max(axis=2)
    h = h @ Ws[-1]
    mean = h.mean(0)
    var = ((h - mean) ** 2).mean(0)
    hn = (h - mean) / jnp.sqrt(var + 1e-5) * params["gamma"] + params["beta"]
    h3 = hn.reshape(B, T, D)
    wk, wb = params["wk"], params["wb"]
    diff = wk[:, 0] * h3[:, :-1, :] + wk[:, 1] * h3[:, 1:, :] + wb
    q = jnp.sum(jnp.abs(diff), axis=(1, 2))
    qbar = params["a"][0] * jnp.sum(h3[:, 0, :] ** 2, axis=1)
    logits = -q + qbar + params["m"][0]
    return logits, h3


if __name__ == "__main__":
    key = jax.random.PRNGKey(0)
    num_dim = 8
    h_sizes = [32, 32, 8]        # last hidden size must equal num_dim
    pool_size = 2
    # ar_order=1 -> time window (t, t-1); batch=64 gives 128 rows so the row
    # dimension fills (8,128) tiles instead of running the kernel 90% empty.
    batch, T = 64, 2

    k_x, k_p = jax.random.split(key)
    x = jax.random.normal(k_x, (batch, T, num_dim), jnp.float32)
    params = init_params(k_p, num_dim, h_sizes, pool_size)

    logits, h = net_forward(x, params, pool_size=pool_size)
    jax.block_until_ready((logits, h))

    ref_logits, ref_h = net_forward_ref(x, params, pool_size)
    assert logits.shape == ref_logits.shape and h.shape == ref_h.shape
    # 5e-3 tolerance: kernel accumulates matmuls in f32 on the MXU while the
    # XLA reference uses default matmul precision.
    assert jnp.allclose(logits, ref_logits, atol=5e-3, rtol=5e-3), (logits, ref_logits)
    assert jnp.allclose(h, ref_h, atol=5e-3, rtol=5e-3)

    print("KERNEL_OK")
</pallas_src>

<mosaic_0001>
module attributes {stable_mosaic.version = 11 : i64} {
  func.func @net_kernel(%arg0: i32, %arg1: memref<128x8xf32, #tpu.memory_space<vmem>>, %arg2: memref<8x64xf32, #tpu.memory_space<vmem>>, %arg3: memref<1x64xf32, #tpu.memory_space<vmem>>, %arg4: memref<32x64xf32, #tpu.memory_space<vmem>>, %arg5: memref<1x64xf32, #tpu.memory_space<vmem>>, %arg6: memref<32x8xf32, #tpu.memory_space<vmem>>, %arg7: memref<5x8xf32, #tpu.memory_space<vmem>>, %arg8: memref<1x2xf32, #tpu.memory_space<smem>>, %arg9: memref<1x64xf32, #tpu.memory_space<vmem>>, %arg10: memref<128x8xf32, #tpu.memory_space<vmem>>) attributes {dimension_semantics = [#tpu.dimension_semantics<arbitrary>], iteration_bounds = array<i64: 1>, scalar_prefetch = 0 : i64, scratch_operands = 0 : i64, tpu.core_type = #tpu.core_type<tc>, window_params = [{pipeline_mode = #tpu.pipeline_mode<synchronous>, transform_indices = @transform_0, window_bounds = array<i64: 128, 8>}, {pipeline_mode = #tpu.pipeline_mode<synchronous>, transform_indices = @transform_1, window_bounds = array<i64: 8, 64>}, {pipeline_mode = #tpu.pipeline_mode<synchronous>, transform_indices = @transform_2, window_bounds = array<i64: 1, 64>}, {pipeline_mode = #tpu.pipeline_mode<synchronous>, transform_indices = @transform_3, window_bounds = array<i64: 32, 64>}, {pipeline_mode = #tpu.pipeline_mode<synchronous>, transform_indices = @transform_4, window_bounds = array<i64: 1, 64>}, {pipeline_mode = #tpu.pipeline_mode<synchronous>, transform_indices = @transform_5, window_bounds = array<i64: 32, 8>}, {pipeline_mode = #tpu.pipeline_mode<synchronous>, transform_indices = @transform_6, window_bounds = array<i64: 5, 8>}, {transform_indices = @transform_7, window_bounds = array<i64: 1, 2>}, {pipeline_mode = #tpu.pipeline_mode<synchronous>, transform_indices = @transform_8, window_bounds = array<i64: 1, 64>}, {pipeline_mode = #tpu.pipeline_mode<synchronous>, transform_indices = @transform_9, window_bounds = array<i64: 128, 8>}]} {
    %c0 = arith.constant 0 : index
    %c0_0 = arith.constant 0 : index
    %0 = vector.load %arg1[%c0, %c0_0] : memref<128x8xf32, #tpu.memory_space<vmem>>, vector<128x8xf32>
    %c0_1 = arith.constant 0 : index
    %c0_2 = arith.constant 0 : index
    %1 = vector.load %arg2[%c0_1, %c0_2] : memref<8x64xf32, #tpu.memory_space<vmem>>, vector<8x64xf32>
    %cst = arith.constant dense<0.000000e+00> : vector<128x64xf32>
    %2 = tpu.matmul %0, %1, %cst {dimension_numbers = #tpu.dot_dimension_numbers<[1], [0], [0], [1], [0, 0, 1, 1], [], []>} : vector<128x8xf32>, vector<8x64xf32>, vector<128x64xf32> -> vector<128x64xf32>
    %c0_3 = arith.constant 0 : index
    %c0_4 = arith.constant 0 : index
    %3 = vector.load %arg3[%c0_3, %c0_4] : memref<1x64xf32, #tpu.memory_space<vmem>>, vector<1x64xf32>
    %4 = vector.broadcast %3 : vector<1x64xf32> to vector<128x64xf32>
    %5 = arith.addf %2, %4 : vector<128x64xf32>
    %6 = vector.extract_strided_slice %5 {offsets = [0, 0], sizes = [128, 32], strides = [1, 1]} : vector<128x64xf32> to vector<128x32xf32>
    %7 = vector.extract_strided_slice %5 {offsets = [0, 32], sizes = [128, 32], strides = [1, 1]} : vector<128x64xf32> to vector<128x32xf32>
    %8 = arith.maximumf %6, %7 : vector<128x32xf32>
    %c0_5 = arith.constant 0 : index
    %c0_6 = arith.constant 0 : index
    %9 = vector.load %arg4[%c0_5, %c0_6] : memref<32x64xf32, #tpu.memory_space<vmem>>, vector<32x64xf32>
    %cst_7 = arith.constant dense<0.000000e+00> : vector<128x64xf32>
    %10 = tpu.matmul %8, %9, %cst_7 {dimension_numbers = #tpu.dot_dimension_numbers<[1], [0], [0], [1], [0, 0, 1, 1], [], []>} : vector<128x32xf32>, vector<32x64xf32>, vector<128x64xf32> -> vector<128x64xf32>
    %c0_8 = arith.constant 0 : index
    %c0_9 = arith.constant 0 : index
    %11 = vector.load %arg5[%c0_8, %c0_9] : memref<1x64xf32, #tpu.memory_space<vmem>>, vector<1x64xf32>
    %12 = vector.broadcast %11 : vector<1x64xf32> to vector<128x64xf32>
    %13 = arith.addf %10, %12 : vector<128x64xf32>
    %14 = vector.extract_strided_slice %13 {offsets = [0, 0], sizes = [128, 32], strides = [1, 1]} : vector<128x64xf32> to vector<128x32xf32>
    %15 = vector.extract_strided_slice %13 {offsets = [0, 32], sizes = [128, 32], strides = [1, 1]} : vector<128x64xf32> to vector<128x32xf32>
    %16 = arith.maximumf %14, %15 : vector<128x32xf32>
    %c0_10 = arith.constant 0 : index
    %c0_11 = arith.constant 0 : index
    %17 = vector.load %arg6[%c0_10, %c0_11] : memref<32x8xf32, #tpu.memory_space<vmem>>, vector<32x8xf32>
    %cst_12 = arith.constant dense<0.000000e+00> : vector<128x8xf32>
    %18 = tpu.matmul %16, %17, %cst_12 {dimension_numbers = #tpu.dot_dimension_numbers<[1], [0], [0], [1], [0, 0, 1, 1], [], []>} : vector<128x32xf32>, vector<32x8xf32>, vector<128x8xf32> -> vector<128x8xf32>
    %c0_13 = arith.constant 0 : index
    %c0_14 = arith.constant 0 : index
    %19 = vector.load %arg7[%c0_13, %c0_14] : memref<5x8xf32, #tpu.memory_space<vmem>>, vector<1x8xf32>
    %c1 = arith.constant 1 : index
    %c0_15 = arith.constant 0 : index
    %20 = vector.load %arg7[%c1, %c0_15] : memref<5x8xf32, #tpu.memory_space<vmem>>, vector<1x8xf32>
    %c2 = arith.constant 2 : index
    %c0_16 = arith.constant 0 : index
    %21 = vector.load %arg7[%c2, %c0_16] : memref<5x8xf32, #tpu.memory_space<vmem>>, vector<1x8xf32>
    %c3 = arith.constant 3 : index
    %c0_17 = arith.constant 0 : index
    %22 = vector.load %arg7[%c3, %c0_17] : memref<5x8xf32, #tpu.memory_space<vmem>>, vector<1x8xf32>
    %c4 = arith.constant 4 : index
    %c0_18 = arith.constant 0 : index
    %23 = vector.load %arg7[%c4, %c0_18] : memref<5x8xf32, #tpu.memory_space<vmem>>, vector<1x8xf32>
    %cst_19 = arith.constant dense<0.000000e+00> : vector<8xf32>
    %24 = vector.multi_reduction <add>, %18, %cst_19 [0] : vector<128x8xf32> to vector<8xf32>
    %25 = vector.shape_cast %24 : vector<8xf32> to vector<1x8xf32>
    %cst_20 = arith.constant 7.812500e-03 : f32
    %26 = vector.broadcast %cst_20 : f32 to vector<1x8xf32>
    %27 = arith.mulf %25, %26 : vector<1x8xf32>
    %28 = arith.mulf %18, %18 : vector<128x8xf32>
    %cst_21 = arith.constant dense<0.000000e+00> : vector<8xf32>
    %29 = vector.multi_reduction <add>, %28, %cst_21 [0] : vector<128x8xf32> to vector<8xf32>
    %30 = vector.shape_cast %29 : vector<8xf32> to vector<1x8xf32>
    %cst_22 = arith.constant 7.812500e-03 : f32
    %31 = vector.broadcast %cst_22 : f32 to vector<1x8xf32>
    %32 = arith.mulf %30, %31 : vector<1x8xf32>
    %33 = arith.mulf %27, %27 : vector<1x8xf32>
    %34 = arith.subf %32, %33 : vector<1x8xf32>
    %35 = vector.broadcast %27 : vector<1x8xf32> to vector<128x8xf32>
    %36 = arith.subf %18, %35 : vector<128x8xf32>
    %cst_23 = arith.constant 9.99999974E-6 : f32
    %37 = vector.broadcast %cst_23 : f32 to vector<1x8xf32>
    %38 = arith.addf %34, %37 : vector<1x8xf32>
    %39 = math.rsqrt %38 : vector<1x8xf32>
    %40 = vector.broadcast %39 : vector<1x8xf32> to vector<128x8xf32>
    %41 = arith.mulf %36, %40 : vector<128x8xf32>
    %42 = vector.broadcast %19 : vector<1x8xf32> to vector<128x8xf32>
    %43 = arith.mulf %41, %42 : vector<128x8xf32>
    %44 = vector.broadcast %20 : vector<1x8xf32> to vector<128x8xf32>
    %45 = arith.addf %43, %44 : vector<128x8xf32>
    %c0_24 = arith.constant 0 : index
    %c0_25 = arith.constant 0 : index
    %46 = vector.load %arg10[%c0_24, %c0_25] : memref<128x8xf32, #tpu.memory_space<vmem>>, vector<128x8xf32>
    tpu.vector_store %arg10[%c0_24, %c0_25], %45 {strides = array<i32>} : memref<128x8xf32, #tpu.memory_space<vmem>>, vector<128x8xf32>,
    %47 = vector.extract_strided_slice %45 {offsets = [0, 0], sizes = [64, 8], strides = [1, 1]} : vector<128x8xf32> to vector<64x8xf32>
    %48 = vector.extract_strided_slice %45 {offsets = [64, 0], sizes = [64, 8], strides = [1, 1]} : vector<128x8xf32> to vector<64x8xf32>
    %49 = vector.broadcast %21 : vector<1x8xf32> to vector<64x8xf32>
    %50 = arith.mulf %49, %47 : vector<64x8xf32>
    %51 = vector.broadcast %22 : vector<1x8xf32> to vector<64x8xf32>
    %52 = arith.mulf %51, %48 : vector<64x8xf32>
    %53 = arith.addf %50, %52 : vector<64x8xf32>
    %54 = vector.broadcast %23 : vector<1x8xf32> to vector<64x8xf32>
    %55 = arith.addf %53, %54 : vector<64x8xf32>
    %56 = math.absf %55 : vector<64x8xf32>
    %57 = vector.extract_strided_slice %45 {offsets = [0, 0], sizes = [64, 8], strides = [1, 1]} : vector<128x8xf32> to vector<64x8xf32>
    %c0_26 = arith.constant 0 : index
    %c0_27 = arith.constant 0 : index
    %58 = memref.load %arg8[%c0_26, %c0_27] : memref<1x2xf32, #tpu.memory_space<smem>>
    %59 = arith.mulf %57, %57 : vector<64x8xf32>
    %60 = vector.broadcast %58 : f32 to vector<64x8xf32>
    %61 = arith.mulf %60, %59 : vector<64x8xf32>
    %62 = arith.subf %61, %56 : vector<64x8xf32>
    %cst_28 = arith.constant 1.000000e+00 : f32
    %63 = vector.broadcast %cst_28 : f32 to vector<1x8xf32>
    %cst_29 = arith.constant dense<0.000000e+00> : vector<1x64xf32>
    %64 = tpu.matmul %63, %62, %cst_29 {dimension_numbers = #tpu.dot_dimension_numbers<[1], [1], [0], [0], [0, 0, 1, 0], [], []>} : vector<1x8xf32>, vector<64x8xf32>, vector<1x64xf32> -> vector<1x64xf32>
    %c0_30 = arith.constant 0 : index
    %c1_31 = arith.constant 1 : index
    %65 = memref.load %arg8[%c0_30, %c1_31] : memref<1x2xf32, #tpu.memory_space<smem>>
    %66 = vector.broadcast %65 : f32 to vector<1x64xf32>
    %67 = arith.addf %64, %66 : vector<1x64xf32>
    %c0_32 = arith.constant 0 : index
    %c0_33 = arith.constant 0 : index
    %68 = vector.load %arg9[%c0_32, %c0_33] : memref<1x64xf32, #tpu.memory_space<vmem>>, vector<1x64xf32>
    tpu.vector_store %arg9[%c0_32, %c0_33], %67 {strides = array<i32>} : memref<1x64xf32, #tpu.memory_space<vmem>>, vector<1x64xf32>,
    return
  }
  func.func @transform_0(%arg0: i32) -> (i32, i32) {
    %c0_i32 = arith.constant 0 : i32
    %c0_i32_0 = arith.constant 0 : i32
    %c0_i32_1 = arith.constant 0 : i32
    return %c0_i32, %c0_i32_0 : i32, i32
  }
  func.func @transform_1(%arg0: i32) -> (i32, i32) {
    %c0_i32 = arith.constant 0 : i32
    %c0_i32_0 = arith.constant 0 : i32
    %c0_i32_1 = arith.constant 0 : i32
    return %c0_i32, %c0_i32_0 : i32, i32
  }
  func.func @transform_2(%arg0: i32) -> (i32, i32) {
    %c0_i32 = arith.constant 0 : i32
    %c0_i32_0 = arith.constant 0 : i32
    %c0_i32_1 = arith.constant 0 : i32
    return %c0_i32, %c0_i32_0 : i32, i32
  }
  func.func @transform_3(%arg0: i32) -> (i32, i32) {
    %c0_i32 = arith.constant 0 : i32
    %c0_i32_0 = arith.constant 0 : i32
    %c0_i32_1 = arith.constant 0 : i32
    return %c0_i32, %c0_i32_0 : i32, i32
  }
  func.func @transform_4(%arg0: i32) -> (i32, i32) {
    %c0_i32 = arith.constant 0 : i32
    %c0_i32_0 = arith.constant 0 : i32
    %c0_i32_1 = arith.constant 0 : i32
    return %c0_i32, %c0_i32_0 : i32, i32
  }
  func.func @transform_5(%arg0: i32) -> (i32, i32) {
    %c0_i32 = arith.constant 0 : i32
    %c0_i32_0 = arith.constant 0 : i32
    %c0_i32_1 = arith.constant 0 : i32
    return %c0_i32, %c0_i32_0 : i32, i32
  }
  func.func @transform_6(%arg0: i32) -> (i32, i32) {
    %c0_i32 = arith.constant 0 : i32
    %c0_i32_0 = arith.constant 0 : i32
    %c0_i32_1 = arith.constant 0 : i32
    return %c0_i32, %c0_i32_0 : i32, i32
  }
  func.func @transform_7(%arg0: i32) -> (i32, i32) {
    %c0_i32 = arith.constant 0 : i32
    %c0_i32_0 = arith.constant 0 : i32
    %c0_i32_1 = arith.constant 0 : i32
    return %c0_i32, %c0_i32_0 : i32, i32
  }
  func.func @transform_8(%arg0: i32) -> (i32, i32) {
    %c0_i32 = arith.constant 0 : i32
    %c0_i32_0 = arith.constant 0 : i32
    %c0_i32_1 = arith.constant 0 : i32
    return %c0_i32, %c0_i32_0 : i32, i32
  }
  func.func @transform_9(%arg0: i32) -> (i32, i32) {
    %c0_i32 = arith.constant 0 : i32
    %c0_i32_0 = arith.constant 0 : i32
    %c0_i32_1 = arith.constant 0 : i32
    return %c0_i32, %c0_i32_0 : i32, i32
  }
}

</mosaic_0001>

<bundles_post_ra>
// kernel: tpu_custom_call.1
= control target key start
LH: loop header
LB: loop body
LE: loop exit
PB: predicated region body
PF: predicated region fallthrough
CT: control target
= control target key end

     0   :  { %15 = vsyncpa [#allocation4], 0  ;;  %s2127_s0 = inlined_call_operand.vmem [shape: f32[128,8], index: 0, kind: input, shape index: {}]   ;;  %s2128_s1 = inlined_call_operand.vmem [shape: f32[8,64], index: 1, kind: input, shape index: {}]   ;;  %s2129_s2 = inlined_call_operand.vmem [shape: f32[1,64], index: 2, kind: input, shape index: {}]   ;;  %s2130_s3 = inlined_call_operand.vmem [shape: f32[32,64], index: 3, kind: input, shape index: {}]   ;;  %s2131_s4 = inlined_call_operand.vmem [shape: f32[1,64], index: 4, kind: input, shape index: {}]   ;;  %s2132_s5 = inlined_call_operand.vmem [shape: f32[32,8], index: 5, kind: input, shape index: {}]   ;;  %s2133_s6 = inlined_call_operand.vmem [shape: f32[5,8], index: 6, kind: input, shape index: {}]   ;;  %s2134_s7 = inlined_call_operand.vmem [shape: f32[1,2], index: 7, kind: input, shape index: {}]   ;;  %s2135_s8 = inlined_call_operand.hbm [shape: f32[1,64], index: 8, kind: output, shape index: {0}]   ;;  %s2136_s9 = inlined_call_operand.vmem [shape: f32[128,8], index: 9, kind: output, shape index: {1}]  }
   0x1   :  { %16 = vsyncpa [#allocation3], 0  ;;  %s37_s11 = sshll.u32 %s2134_s7, 4  ;;  %s38_s11 = int_to_ptr.vmem [resolvable:$true] %s37_s11 }
   0x2   :  { %s1495_s12 = scalar_lea.vmem %s38_s11, 16  ;;  %p1500_p1 = scmp.lt.s32.totalorder %s38_s11, %s38_s11 }
   0x3   :  { %p1496_p0 = scmp.ne.s32.totalorder %s38_s11, %s1495_s12  ;;  %p1501_p2 = scmp.lt.s32.totalorder %s1495_s12, %s1495_s12 }
   0x5   :  { %p1502_p3 = por %p1501_p2, %p1500_p1 }
   0x7   :  { %p1503_p4 = pnand %p1502_p3, %p1496_p0 }
   0x9   :  { %1506 = shalt.err (!%p1503_p4)
}
   0xa   :  { %s1533_s13 = smov [#allocation2]  }
   0xb   :  { %40 = dma.vmem_to_smem %s38_s11, 16, %s1533_s13, [#allocation4]  }
   0xc   :  { %1529 = dma.done.wait [#allocation4], 16  }
   0xd   :  { %1530 = vsyncadd [#allocation4], 4294967280 }
   0xe   :  { %44 = sfence }
   0xf   :  { %v61_v0 = vld [vmem:[%s2128_s1] sm:$0xff]  ;;  %vm69_vm0 = vcmask 64512   ;;  %v46_v2 = vld [vmem:[%s2127_s0 + $0x8] sm:$0xff]  ;;  %v47_v3 = vld [vmem:[%s2127_s0 + $0x10] sm:$0xff]  ;;  %s1534_s11 = smov 96   ;;  %vm354_vm1 = vcmask 261120  }
  0x10   :  { %v45_v1 = vld [vmem:[%s2127_s0] sm:$0xff]  ;;  %1343 = vmatprep.subr.mxu0 %v61_v0  ;;  %1484 = vmatprep.subr.mxu1 %v61_v0  ;;  %v55_v4 = vld [vmem:[%s2127_s0 + $0x50] sm:$0xff]  ;;  %v48_v5 = vld [vmem:[%s2127_s0 + $0x18] sm:$0xff]  ;;  %vm1536_vm2 = vmmov 0   ;;  %s1539_s30 = smov [#allocation5]   ;;  %vm1191_vm4 = vcmask 516096  }
  0x11   :  { %1345 = vmatprep.mubr.msk.f32.mxu0 %vm69_vm0, %v45_v1  ;;  %1344 = vmatpush3.msra.mxu0 %v61_v0  ;;  %v56_v6 = vld [vmem:[%s2127_s0 + $0x58] sm:$0xff]  ;;  %v57_v7 = vld [vmem:[%s2127_s0 + $0x60] sm:$0xff]  ;;  %v58_v9 = vld [vmem:[%s2127_s0 + $0x68] sm:$0xff] }
  0x12   :  { %1346 = vmatmul.mubr.msk.f32.vlgmr.msra.gmra.mrb[0].mxu0 %vm69_vm0, %v46_v2  ;;  %1485 = vmatpush3.msra.mxu1 %v61_v0  ;;  %v49_v8 = vld [vmem:[%s2127_s0 + $0x20] sm:$0xff]  ;;  %v59_v10 = vld [vmem:[%s2127_s0 + $0x70] sm:$0xff]  ;;  %v50_v11 = vld [vmem:[%s2127_s0 + $0x28] sm:$0xff] }
  0x13   :  { %1348 = vmatprep.mubr.msk.f32.mxu0 %vm69_vm0, %v47_v3  ;;  %1360 = vmatprep.mubr.msk.f32.mxu1 %vm69_vm0, %v55_v4  ;;  %v51_v12 = vld [vmem:[%s2127_s0 + $0x30] sm:$0xff]  ;;  %v60_v13 = vld [vmem:[%s2127_s0 + $0x78] sm:$0xff]  ;;  %v53_v15 = vld [vmem:[%s2127_s0 + $0x40] sm:$0xff] }
  0x14   :  { %1361 = vmatmul.mubr.msk.f32.vlgmr.msra.gmra.mrb[0].mxu1 %vm69_vm0, %v56_v6  ;;  %v52_v14 = vld [vmem:[%s2127_s0 + $0x38] sm:$0xff]  ;;  %v54_v16 = vld [vmem:[%s2127_s0 + $0x48] sm:$0xff]  ;;  %v343_v17 = vld [vmem:[%s2130_s3] sm:$0xff]  ;;  %s1199_s0 = sshll.u32 %s1539_s30, 4  ;;  %s1200_s0 = int_to_ptr.vmem [resolvable:$true] %s1199_s0 }
  0x15   :  { %1363 = vmatprep.mubr.msk.f32.mxu1 %vm69_vm0, %v57_v7  ;;  %v344_v18 = vld [vmem:[%s2130_s3 + $0x8] sm:$0xff]  ;;  %v345_v20 = vld [vmem:[%s2130_s3 + $0x10] sm:$0xff]  ;;  %v346_v21 = vld [vmem:[%s2130_s3 + $0x18] sm:$0xff]  ;;  %s1507_s10 = scalar_lea.vmem %s1200_s0, 16  ;;  %p1512_p6 = scmp.lt.s32.totalorder %s1200_s0, %s1200_s0 }
  0x16   :  { %1349 = vmatmul.mubr.msk.f32.gmra.mrb[2].mxu0 %vm69_vm0, %v48_v5  ;;  %v1452_v19 = vpack.c.bf16 %v344_v18, %v343_v17  ;;  %v1456_v22 = vpack.c.bf16 %v346_v21, %v345_v20  ;;  %v1212_v23 = vld [vmem:[%s2129_s2] ss:$0 sm:$0xff]  ;;  %vm2033_vm3 = vmpackc.low %vm69_vm0, %vm69_vm0  ;;  %p1508_p5 = scmp.ne.s32.totalorder %s1200_s0, %s1507_s10 }
  0x17   :  { %1351 = vmatprep.mubr.msk.f32.mxu0 %vm69_vm0, %v49_v8 }
  0x18   :  { %1364 = vmatmul.mubr.msk.f32.gmra.mrb[2].mxu1 %vm69_vm0, %v58_v9  ;;  %1453 = vmatprep.subr.bf16.mxu1 %v1452_v19 }
  0x19   :  { %1366 = vmatprep.mubr.msk.f32.mxu1 %vm69_vm0, %v59_v10  ;;  %1455 = vmatpush3.bf16.msra.mxu1 %v1452_v19 }
  0x1a   :  { %1352 = vmatmul.mubr.msk.f32.gmra.mrb[4].mxu0 %vm69_vm0, %v50_v11  ;;  %1457 = vmatprep.subr.bf16.mxu1 %v1456_v22 }
  0x1b   :  { %1354 = vmatprep.mubr.msk.f32.mxu0 %vm69_vm0, %v51_v12 }
  0x1c   :  { %1367 = vmatmul.mubr.msk.f32.gmra.mrb[4].mxu1 %vm69_vm0, %v60_v13 }
  0x1d   :  { %1459 = vmatpush3.bf16.msra.mxu1 %v1456_v22 }
  0x1e   :  { %1355 = vmatmul.mubr.msk.f32.gmra.mrb[6].mxu0 %vm69_vm0, %v52_v14 }
  0x1f   :  { %1357 = vmatprep.mubr.msk.f32.mxu0 %vm69_vm0, %v53_v15 }
  0x22   :  { %1358 = vmatmul.mubr.msk.f32.gmra.mrb[8].mxu0 %vm69_vm0, %v54_v16 }
  0xe5   :  { %v1347_v24 = vpop.f32.mrb[0].mxu0 }
  0xe6   :  { %v184_v25 = vpop.f32.mrb[1].mxu0  ;;  %v190_v31 = vadd.f32 %v1347_v24, %v1212_v23  ;;  %v628_v24 = vld [vmem:[%s2132_s5] sm:$0xff] }
  0xe7   :  { %v185_v26 = vadd.f32 %v1212_v23, %v184_v25  ;;  %v1362_v27 = vpop.f32.mrb[0].mxu1  ;;  %v629_v25 = vld [vmem:[%s2132_s5 + $0x8] sm:$0xff] }
  0xe8   :  { %v234_v28 = vpop.f32.mrb[1].mxu1  ;;  %v240_v52 = vadd.f32 %v1362_v27, %v1212_v23  ;;  %v1460_v27 = vpack.c.bf16 %v629_v25, %v628_v24 }
  0xe9   :  { %v1350_v29 = vpop.f32.mrb[2].mxu0  ;;  %279 = vrot.lane.b32.xlu0 %v185_v26, %s1534_s11  ;;  %v235_v49 = vadd.f32 %v1212_v23, %v234_v28  ;;  %v631_v28 = vld [vmem:[%s2132_s5 + $0x18] sm:$0xff] }
  0xea   :  { %v194_v30 = vpop.f32.mrb[3].mxu0  ;;  %v200_v37 = vadd.f32 %v1350_v29, %v1212_v23  ;;  %1461 = vmatprep.subr.bf16.mxu0 %v1460_v27 }
  0xeb   :  { %v195_v32 = vadd.f32 %v1212_v23, %v194_v30  ;;  %v1365_v33 = vpop.f32.mrb[2].mxu1  ;;  %1463 = vmatpush3.bf16.msra.mxu0 %v1460_v27  ;;  %v1229_v30 = vld [vmem:[%s2131_s4] ss:$0 sm:$0xff]  ;;  %s1066_s4 = sld [smem:[#allocation2]] }
  0xec   :  { %v244_v34 = vpop.f32.mrb[3].mxu1  ;;  %v250_v54 = vadd.f32 %v1365_v33, %v1212_v23 }
  0xed   :  { %v1353_v35 = vpop.f32.mrb[4].mxu0  ;;  %283 = vrot.lane.b32.xlu1 %v195_v32, %s1534_s11  ;;  %281 = vrot.lane.b32.xlu0 %v190_v31, %s1534_s11  ;;  %v245_v51 = vadd.f32 %v1212_v23, %v244_v34 }
  0xee   :  { %v204_v36 = vpop.f32.mrb[5].mxu0  ;;  %v210_v43 = vadd.f32 %v1353_v35, %v1212_v23 }
  0xef   :  { %v205_v38 = vadd.f32 %v1212_v23, %v204_v36  ;;  %v1368_v39 = vpop.f32.mrb[4].mxu1 }
  0xf0   :  { %v254_v40 = vpop.f32.mrb[5].mxu1  ;;  %v260_v55 = vadd.f32 %v1368_v39, %v1212_v23 }
  0xf1   :  { %v1356_v41 = vpop.f32.mrb[6].mxu0  ;;  %285 = vrot.lane.b32.xlu1 %v200_v37, %s1534_s11  ;;  %287 = vrot.lane.b32.xlu0 %v205_v38, %s1534_s11  ;;  %v255_v53 = vadd.f32 %v1212_v23, %v254_v40 }
  0xf2   :  { %v214_v42 = vpop.f32.mrb[7].mxu0  ;;  %v220_v47 = vadd.f32 %v1356_v41, %v1212_v23 }
  0xf3   :  { %v215_v44 = vadd.f32 %v1212_v23, %v214_v42 }
  0xf5   :  { %v1359_v45 = vpop.f32.mrb[8].mxu0  ;;  %289 = vrot.lane.b32.xlu1 %v210_v43, %s1534_s11  ;;  %291 = vrot.lane.b32.xlu0 %v215_v44, %s1534_s11 }
  0xf6   :  { %v224_v46 = vpop.f32.mrb[9].mxu0  ;;  %v230_v50 = vadd.f32 %v1359_v45, %v1212_v23 }
  0xf7   :  { %v225_v48 = vadd.f32 %v1212_v23, %v224_v46 }
  0xf9   :  { %293 = vrot.lane.b32.xlu1 %v220_v47, %s1534_s11  ;;  %295 = vrot.lane.b32.xlu0 %v225_v48, %s1534_s11 }
  0xfd   :  { %297 = vrot.lane.b32.xlu1 %v230_v50, %s1534_s11  ;;  %299 = vrot.lane.b32.xlu0 %v235_v49, %s1534_s11 }
 0x101   :  { %301 = vrot.lane.b32.xlu1 %v240_v52, %s1534_s11  ;;  %303 = vrot.lane.b32.xlu0 %v245_v51, %s1534_s11 }
 0x105   :  { %305 = vrot.lane.b32.xlu1 %v250_v54, %s1534_s11  ;;  %307 = vrot.lane.b32.xlu0 %v255_v53, %s1534_s11 }
 0x109   :  { %309 = vrot.lane.b32.xlu1 %v260_v55, %s1534_s11 }
 0x15b   :  { %v280_v56 = vpop.permute.xlu0 %279 }
 0x15c   :  { %v327_v57 = vmax.f32 %v185_v26, %v280_v56  ;;  %v630_v26 = vld [vmem:[%s2132_s5 + $0x10] sm:$0xff] }
 0x15d   :  { %v1464_v29 = vpack.c.bf16 %v631_v28, %v630_v26 }
 0x15e   :  { %1377 = vmatprep.mubr.msk.f32.mxu1 %vm354_vm1, %v327_v57 }
 0x15f   :  { %v284_v58 = vpop.permute.xlu1 %283  ;;  %v282_v59 = vpop.permute.xlu0 %281  ;;  %1465 = vmatprep.subr.bf16.mxu0 %v1464_v29 }
 0x160   :  { %v329_v60 = vmax.f32 %v195_v32, %v284_v58  ;;  %v328_v61 = vmax.f32 %v190_v31, %v282_v59  ;;  %1467 = vmatpush3.bf16.msra.mxu0 %v1464_v29 }
 0x162   :  { %1378 = vmatmul.mubr.msk.f32.vlgmr.msra.gmra.mrb[6].mxu1 %vm354_vm1, %v328_v61 }
 0x163   :  { %v286_v62 = vpop.permute.xlu1 %285  ;;  %1380 = vmatprep.mubr.msk.f32.mxu1 %vm354_vm1, %v329_v60  ;;  %v288_v63 = vpop.permute.xlu0 %287 }
 0x164   :  { %v330_v0 = vmax.f32 %v200_v37, %v286_v62  ;;  %v331_v1 = vmax.f32 %v205_v38, %v288_v63 }
 0x166   :  { %1381 = vmatmul.mubr.msk.f32.gmra.mrb[8].mxu1 %vm354_vm1, %v330_v0 }
 0x167   :  { %v290_v2 = vpop.permute.xlu1 %289  ;;  %1383 = vmatprep.mubr.msk.f32.mxu1 %vm354_vm1, %v331_v1  ;;  %v292_v3 = vpop.permute.xlu0 %291 }
 0x168   :  { %v332_v4 = vmax.f32 %v210_v43, %v290_v2  ;;  %v333_v5 = vmax.f32 %v215_v44, %v292_v3 }
 0x16a   :  { %1384 = vmatmul.mubr.msk.f32.gmra.mrb[10].mxu1 %vm354_vm1, %v332_v4 }
 0x16b   :  { %v294_v6 = vpop.permute.xlu1 %293  ;;  %1386 = vmatprep.mubr.msk.f32.mxu1 %vm354_vm1, %v333_v5  ;;  %v296_v7 = vpop.permute.xlu0 %295 }
 0x16c   :  { %v334_v8 = vmax.f32 %v220_v47, %v294_v6  ;;  %v335_v9 = vmax.f32 %v225_v48, %v296_v7 }
 0x16e   :  { %1387 = vmatmul.mubr.msk.f32.gmra.mrb[12].mxu1 %vm354_vm1, %v334_v8 }
 0x16f   :  { %v298_v10 = vpop.permute.xlu1 %297  ;;  %1389 = vmatprep.mubr.msk.f32.mxu1 %vm354_vm1, %v335_v9  ;;  %v300_v11 = vpop.permute.xlu0 %299 }
 0x170   :  { %v336_v12 = vmax.f32 %v230_v50, %v298_v10  ;;  %v337_v13 = vmax.f32 %v235_v49, %v300_v11 }
 0x172   :  { %1390 = vmatmul.mubr.msk.f32.gmra.mrb[14].mxu1 %vm354_vm1, %v336_v12 }
 0x173   :  { %v302_v14 = vpop.permute.xlu1 %301  ;;  %1392 = vmatprep.mubr.msk.f32.mxu1 %vm354_vm1, %v337_v13  ;;  %v304_v15 = vpop.permute.xlu0 %303 }
 0x174   :  { %v338_v16 = vmax.f32 %v240_v52, %v302_v14  ;;  %v339_v17 = vmax.f32 %v245_v51, %v304_v15 }
 0x176   :  { %1393 = vmatmul.mubr.msk.f32.gmra.mrb[16].mxu1 %vm354_vm1, %v338_v16 }
 0x177   :  { %v306_v18 = vpop.permute.xlu1 %305  ;;  %1395 = vmatprep.mubr.msk.f32.mxu1 %vm354_vm1, %v339_v17  ;;  %v308_v19 = vpop.permute.xlu0 %307 }
 0x178   :  { %v340_v20 = vmax.f32 %v250_v54, %v306_v18  ;;  %v341_v21 = vmax.f32 %v255_v53, %v308_v19 }
 0x17a   :  { %1396 = vmatmul.mubr.msk.f32.gmra.mrb[18].mxu1 %vm354_vm1, %v340_v20 }
 0x17b   :  { %v310_v22 = vpop.permute.xlu1 %309  ;;  %1398 = vmatprep.mubr.msk.f32.mxu1 %vm354_vm1, %v341_v21 }
 0x17c   :  { %v342_v23 = vmax.f32 %v260_v55, %v310_v22 }
 0x17e   :  { %1399 = vmatmul.mubr.msk.f32.gmra.mrb[20].mxu1 %vm354_vm1, %v342_v23 }
 0x235   :  { %v1379_v31 = vpop.f32.mrb[6].mxu1 }
 0x236   :  { %v475_v32 = vadd.f32 %v1379_v31, %v1229_v30  ;;  %v469_v33 = vpop.f32.mrb[7].mxu1  ;;  %v1535_v31 = vmov 0.0|0.0  }
 0x237   :  { %v470_v34 = vadd.f32 %v1229_v30, %v469_v33  ;;  %1468 = vmatprep.subr.bf16.mxu1 %v1535_v31 }
 0x238   :  { %566 = vrot.lane.b32.xlu1 %v475_v32, %s1534_s11 }
 0x239   :  { %v1382_v35 = vpop.f32.mrb[8].mxu1  ;;  %564 = vrot.lane.b32.xlu0 %v470_v34, %s1534_s11 }
 0x23a   :  { %v485_v36 = vadd.f32 %v1382_v35, %v1229_v30  ;;  %v479_v37 = vpop.f32.mrb[9].mxu1 }
 0x23b   :  { %v480_v38 = vadd.f32 %v1229_v30, %v479_v37 }
 0x23c   :  { %570 = vrot.lane.b32.xlu1 %v485_v36, %s1534_s11 }
 0x23d   :  { %568 = vrot.lane.b32.xlu0 %v480_v38, %s1534_s11  ;;  %v1385_v39 = vpop.f32.mrb[10].mxu1 }
 0x23e   :  { %v495_v40 = vadd.f32 %v1385_v39, %v1229_v30  ;;  %v489_v41 = vpop.f32.mrb[11].mxu1 }
 0x23f   :  { %v490_v42 = vadd.f32 %v1229_v30, %v489_v41 }
 0x240   :  { %574 = vrot.lane.b32.xlu1 %v495_v40, %s1534_s11 }
 0x241   :  { %572 = vrot.lane.b32.xlu0 %v490_v42, %s1534_s11  ;;  %v1388_v43 = vpop.f32.mrb[12].mxu1 }
 0x242   :  { %v505_v44 = vadd.f32 %v1388_v43, %v1229_v30  ;;  %v499_v45 = vpop.f32.mrb[13].mxu1 }
 0x243   :  { %v500_v46 = vadd.f32 %v1229_v30, %v499_v45 }
 0x244   :  { %578 = vrot.lane.b32.xlu1 %v505_v44, %s1534_s11 }
 0x245   :  { %576 = vrot.lane.b32.xlu0 %v500_v46, %s1534_s11  ;;  %v1391_v47 = vpop.f32.mrb[14].mxu1 }
 0x246   :  { %v515_v48 = vadd.f32 %v1391_v47, %v1229_v30  ;;  %v509_v49 = vpop.f32.mrb[15].mxu1 }
 0x247   :  { %v510_v50 = vadd.f32 %v1229_v30, %v509_v49 }
 0x248   :  { %582 = vrot.lane.b32.xlu1 %v515_v48, %s1534_s11 }
 0x249   :  { %580 = vrot.lane.b32.xlu0 %v510_v50, %s1534_s11  ;;  %v1394_v51 = vpop.f32.mrb[16].mxu1 }
 0x24a   :  { %v525_v52 = vadd.f32 %v1394_v51, %v1229_v30  ;;  %v519_v53 = vpop.f32.mrb[17].mxu1 }
 0x24b   :  { %v520_v54 = vadd.f32 %v1229_v30, %v519_v53 }
 0x24c   :  { %586 = vrot.lane.b32.xlu1 %v525_v52, %s1534_s11 }
 0x24d   :  { %584 = vrot.lane.b32.xlu0 %v520_v54, %s1534_s11  ;;  %v1397_v55 = vpop.f32.mrb[18].mxu1 }
 0x24e   :  { %v535_v56 = vadd.f32 %v1397_v55, %v1229_v30  ;;  %v529_v57 = vpop.f32.mrb[19].mxu1 }
 0x24f   :  { %v530_v58 = vadd.f32 %v1229_v30, %v529_v57 }
 0x250   :  { %590 = vrot.lane.b32.xlu1 %v535_v56, %s1534_s11 }
 0x251   :  { %588 = vrot.lane.b32.xlu0 %v530_v58, %s1534_s11  ;;  %v1400_v59 = vpop.f32.mrb[20].mxu1 }
 0x252   :  { %v545_v60 = vadd.f32 %v1400_v59, %v1229_v30  ;;  %v539_v61 = vpop.f32.mrb[21].mxu1 }
 0x253   :  { %v540_v62 = vadd.f32 %v1229_v30, %v539_v61 }
 0x254   :  { %594 = vrot.lane.b32.xlu1 %v545_v60, %s1534_s11 }
 0x255   :  { %592 = vrot.lane.b32.xlu0 %v540_v62, %s1534_s11  ;;  %s1511_s11 = scalar_lea.vmem %s1200_s0, 32 }
 0x256   :  { %p1513_p7 = scmp.lt.s32.totalorder %s1511_s11, %s1507_s10 }
 0x258   :  { %p1514_p8 = por %p1513_p7, %p1512_p6 }
 0x25a   :  { %p1515_p9 = pnand %p1514_p8, %p1508_p5 }
 0x2aa   :  { %v567_v63 = vpop.permute.xlu1 %566 }
 0x2ab   :  { %v565_v0 = vpop.permute.xlu0 %564  ;;  %v613_v2 = vmax.f32 %v475_v32, %v567_v63  ;;  %v1537_v32 = vmov 0.0  }
 0x2ac   :  { %v612_v1 = vmax.f32 %v470_v34, %v565_v0  ;;  %1449 = vmatprep.mubr.msk.f32.mxu1 %vm1536_vm2, %v1537_v32 }
 0x2ae   :  { %v571_v3 = vpop.permute.xlu1 %570  ;;  %1409 = vmatprep.mubr.msk.f32.mxu0 %vm354_vm1, %v612_v1 }
 0x2af   :  { %1410 = vmatmul.mubr.msk.f32.vlgmr.msra.gmra.mrb[10].mxu0 %vm354_vm1, %v613_v2  ;;  %v569_v4 = vpop.permute.xlu0 %568  ;;  %v615_v6 = vmax.f32 %v485_v36, %v571_v3 }
 0x2b0   :  { %v614_v5 = vmax.f32 %v480_v38, %v569_v4 }
 0x2b2   :  { %v575_v7 = vpop.permute.xlu1 %574  ;;  %1412 = vmatprep.mubr.msk.f32.mxu0 %vm354_vm1, %v614_v5 }
 0x2b3   :  { %1413 = vmatmul.mubr.msk.f32.gmra.mrb[12].mxu0 %vm354_vm1, %v615_v6  ;;  %v573_v8 = vpop.permute.xlu0 %572  ;;  %v617_v10 = vmax.f32 %v495_v40, %v575_v7 }
 0x2b4   :  { %v616_v9 = vmax.f32 %v490_v42, %v573_v8 }
 0x2b6   :  { %v579_v11 = vpop.permute.xlu1 %578  ;;  %1415 = vmatprep.mubr.msk.f32.mxu0 %vm354_vm1, %v616_v9 }
 0x2b7   :  { %1416 = vmatmul.mubr.msk.f32.gmra.mrb[14].mxu0 %vm354_vm1, %v617_v10  ;;  %v577_v12 = vpop.permute.xlu0 %576  ;;  %v619_v14 = vmax.f32 %v505_v44, %v579_v11 }
 0x2b8   :  { %v618_v13 = vmax.f32 %v500_v46, %v577_v12 }
 0x2ba   :  { %v583_v15 = vpop.permute.xlu1 %582  ;;  %1418 = vmatprep.mubr.msk.f32.mxu0 %vm354_vm1, %v618_v13 }
 0x2bb   :  { %1419 = vmatmul.mubr.msk.f32.gmra.mrb[16].mxu0 %vm354_vm1, %v619_v14  ;;  %v581_v16 = vpop.permute.xlu0 %580  ;;  %v621_v18 = vmax.f32 %v515_v48, %v583_v15 }
 0x2bc   :  { %v620_v17 = vmax.f32 %v510_v50, %v581_v16 }
 0x2be   :  { %v587_v19 = vpop.permute.xlu1 %586  ;;  %1421 = vmatprep.mubr.msk.f32.mxu0 %vm354_vm1, %v620_v17 }
 0x2bf   :  { %1422 = vmatmul.mubr.msk.f32.gmra.mrb[18].mxu0 %vm354_vm1, %v621_v18  ;;  %v585_v20 = vpop.permute.xlu0 %584  ;;  %v623_v22 = vmax.f32 %v525_v52, %v587_v19 }
 0x2c0   :  { %v622_v21 = vmax.f32 %v520_v54, %v585_v20 }
 0x2c2   :  { %v591_v23 = vpop.permute.xlu1 %590  ;;  %1424 = vmatprep.mubr.msk.f32.mxu0 %vm354_vm1, %v622_v21 }
 0x2c3   :  { %1425 = vmatmul.mubr.msk.f32.gmra.mrb[20].mxu0 %vm354_vm1, %v623_v22  ;;  %v589_v24 = vpop.permute.xlu0 %588  ;;  %v625_v26 = vmax.f32 %v535_v56, %v591_v23 }
 0x2c4   :  { %v624_v25 = vmax.f32 %v530_v58, %v589_v24 }
 0x2c6   :  { %v595_v27 = vpop.permute.xlu1 %594  ;;  %1427 = vmatprep.mubr.msk.f32.mxu0 %vm354_vm1, %v624_v25 }
 0x2c7   :  { %1428 = vmatmul.mubr.msk.f32.gmra.mrb[22].mxu0 %vm354_vm1, %v625_v26  ;;  %v593_v28 = vpop.permute.xlu0 %592  ;;  %v627_v30 = vmax.f32 %v545_v60, %v595_v27 }
 0x2c8   :  { %v626_v29 = vmax.f32 %v540_v62, %v593_v28 }
 0x2ca   :  { %1430 = vmatprep.mubr.msk.f32.mxu0 %vm354_vm1, %v626_v29 }
 0x2cb   :  { %1431 = vmatmul.mubr.msk.f32.gmra.mrb[24].mxu0 %vm354_vm1, %v627_v30 }
 0x382   :  { %v1755_v33 = vpop.f32.mrb[10].mxu0 }
 0x383   :  { %v831_v34 = vsel %vm69_vm0, %v1755_v33, 0.0  ;;  %v869_v35 = vmul.f32 %v1755_v33, %v1755_v33  ;;  %v1761_v36 = vpop.f32.mrb[11].mxu0 }
 0x384   :  { %v830_v37 = vsel %vm69_vm0, %v1761_v36, 0.0  ;;  %v868_v38 = vmul.f32 %v1761_v36, %v1761_v36 }
 0x385   :  { %v885_v39 = vsel %vm69_vm0, %v869_v35, 0.0  ;;  %v832_v40 = vadd.f32 %v831_v34, %v830_v37 }
 0x386   :  { %v884_v41 = vsel %vm69_vm0, %v868_v38, 0.0  ;;  %v1769_v42 = vpop.f32.mrb[12].mxu0 }
 0x387   :  { %v886_v43 = vadd.f32 %v885_v39, %v884_v41  ;;  %v1771_v44 = vpop.f32.mrb[13].mxu0  ;;  %v871_v45 = vmul.f32 %v1769_v42, %v1769_v42  ;;  %v835_v49 = vsel %vm69_vm0, %v1769_v42, 0.0 }
 0x388   :  { %v833_v46 = vsel %vm69_vm0, %v1771_v44, 0.0  ;;  %v870_v47 = vmul.f32 %v1771_v44, %v1771_v44 }
 0x389   :  { %v834_v48 = vadd.f32 %v833_v46, %v832_v40  ;;  %v889_v55 = vsel %vm69_vm0, %v871_v45, 0.0 }
 0x38a   :  { %v887_v50 = vsel %vm69_vm0, %v870_v47, 0.0  ;;  %v1782_v51 = vpop.f32.mrb[14].mxu0 }
 0x38b   :  { %v888_v52 = vadd.f32 %v887_v50, %v886_v43  ;;  %v1784_v53 = vpop.f32.mrb[15].mxu0  ;;  %v836_v54 = vadd.f32 %v835_v49, %v834_v48  ;;  %v873_v56 = vmul.f32 %v1782_v51, %v1782_v51  ;;  %v839_v61 = vsel %vm69_vm0, %v1782_v51, 0.0 }
 0x38c   :  { %v837_v57 = vsel %vm69_vm0, %v1784_v53, 0.0  ;;  %v872_v58 = vmul.f32 %v1784_v53, %v1784_v53 }
 0x38d   :  { %v838_v59 = vadd.f32 %v837_v57, %v836_v54  ;;  %v890_v60 = vadd.f32 %v889_v55, %v888_v52  ;;  %v893_v3 = vsel %vm69_vm0, %v873_v56, 0.0 }
 0x38e   :  { %v891_v62 = vsel %vm69_vm0, %v872_v58, 0.0  ;;  %v1796_v63 = vpop.f32.mrb[16].mxu0 }
 0x38f   :  { %v892_v0 = vadd.f32 %v891_v62, %v890_v60  ;;  %v1798_v1 = vpop.f32.mrb[17].mxu0  ;;  %v840_v2 = vadd.f32 %v839_v61, %v838_v59  ;;  %v875_v4 = vmul.f32 %v1796_v63, %v1796_v63  ;;  %v843_v9 = vsel %vm69_vm0, %v1796_v63, 0.0 }
 0x390   :  { %v841_v5 = vsel %vm69_vm0, %v1798_v1, 0.0  ;;  %v874_v6 = vmul.f32 %v1798_v1, %v1798_v1 }
 0x391   :  { %v842_v7 = vadd.f32 %v841_v5, %v840_v2  ;;  %v894_v8 = vadd.f32 %v893_v3, %v892_v0  ;;  %v897_v15 = vsel %vm69_vm0, %v875_v4, 0.0 }
 0x392   :  { %v895_v10 = vsel %vm69_vm0, %v874_v6, 0.0  ;;  %v1810_v11 = vpop.f32.mrb[18].mxu0 }
 0x393   :  { %v896_v12 = vadd.f32 %v895_v10, %v894_v8  ;;  %v1812_v13 = vpop.f32.mrb[19].mxu0  ;;  %v844_v14 = vadd.f32 %v843_v9, %v842_v7  ;;  %v877_v16 = vmul.f32 %v1810_v11, %v1810_v11  ;;  %v847_v21 = vsel %vm69_vm0, %v1810_v11, 0.0 }
 0x394   :  { %v845_v17 = vsel %vm69_vm0, %v1812_v13, 0.0  ;;  %v876_v18 = vmul.f32 %v1812_v13, %v1812_v13 }
 0x395   :  { %v846_v19 = vadd.f32 %v845_v17, %v844_v14  ;;  %v898_v20 = vadd.f32 %v897_v15, %v896_v12  ;;  %v901_v27 = vsel %vm69_vm0, %v877_v16, 0.0 }
 0x396   :  { %v899_v22 = vsel %vm69_vm0, %v876_v18, 0.0  ;;  %v1824_v23 = vpop.f32.mrb[20].mxu0 }
 0x397   :  { %v900_v24 = vadd.f32 %v899_v22, %v898_v20  ;;  %v1826_v25 = vpop.f32.mrb[21].mxu0  ;;  %v848_v26 = vadd.f32 %v847_v21, %v846_v19  ;;  %v879_v28 = vmul.f32 %v1824_v23, %v1824_v23  ;;  %v851_v35 = vsel %vm69_vm0, %v1824_v23, 0.0 }
 0x398   :  { %v849_v29 = vsel %vm69_vm0, %v1826_v25, 0.0  ;;  %v878_v30 = vmul.f32 %v1826_v25, %v1826_v25 }
 0x399   :  { %v850_v32 = vadd.f32 %v849_v29, %v848_v26  ;;  %v902_v34 = vadd.f32 %v901_v27, %v900_v24  ;;  %v905_v43 = vsel %vm69_vm0, %v879_v28, 0.0 }
 0x39a   :  { %v903_v37 = vsel %vm69_vm0, %v878_v30, 0.0  ;;  %v1838_v38 = vpop.f32.mrb[22].mxu0 }
 0x39b   :  { %v904_v39 = vadd.f32 %v903_v37, %v902_v34  ;;  %v1840_v40 = vpop.f32.mrb[23].mxu0  ;;  %v852_v41 = vadd.f32 %v851_v35, %v850_v32  ;;  %v881_v45 = vmul.f32 %v1838_v38, %v1838_v38  ;;  %v855_v50 = vsel %vm69_vm0, %v1838_v38, 0.0 }
 0x39c   :  { %v853_v46 = vsel %vm69_vm0, %v1840_v40, 0.0  ;;  %v880_v47 = vmul.f32 %v1840_v40, %v1840_v40 }
 0x39d   :  { %v854_v48 = vadd.f32 %v853_v46, %v852_v41  ;;  %v906_v49 = vadd.f32 %v905_v43, %v904_v39  ;;  %v909_v58 = vsel %vm69_vm0, %v881_v45, 0.0  ;;  %v1902_v43 = vld [vmem:[%s2133_s6] ss:$0 sm:$0xff]  ;;  %v1904_v45 = vstv %s1066_s4 }
 0x39e   :  { %v907_v52 = vsel %vm69_vm0, %v880_v47, 0.0  ;;  %v1852_v54 = vpop.f32.mrb[24].mxu0 }
 0x39f   :  { %v908_v55 = vadd.f32 %v907_v52, %v906_v49  ;;  %v816_v56 = vpop.f32.mrb[25].mxu0  ;;  %v856_v57 = vadd.f32 %v855_v50, %v854_v48  ;;  %v883_v59 = vmul.f32 %v1852_v54, %v1852_v54  ;;  %v859_v2 = vsel %vm69_vm0, %v1852_v54, 0.0  ;;  %v1913_v50 = vld [vmem:[%s2133_s6 + $0x1] ss:$0 sm:$0xff] }
 0x3a0   :  { %v857_v60 = vsel %vm69_vm0, %v816_v56, 0.0  ;;  %v882_v61 = vmul.f32 %v816_v56, %v816_v56 }
 0x3a1   :  { %v858_v62 = vadd.f32 %v857_v60, %v856_v57  ;;  %v910_v0 = vadd.f32 %v909_v58, %v908_v55  ;;  %v913_v6 = vsel %vm69_vm0, %v883_v59, 0.0 }
 0x3a2   :  { %v911_v3 = vsel %vm69_vm0, %v882_v61, 0.0 }
 0x3a3   :  { %v860_v4 = vadd.f32 %v859_v2, %v858_v62  ;;  %v912_v5 = vadd.f32 %v911_v3, %v910_v0  ;;  %v1926_v62 = vld [vmem:[%s2133_s6 + $0x2] ss:$0 sm:$0xff]  ;;  %v1931_v0 = vld [vmem:[%s2133_s6 + $0x3] ss:$0 sm:$0xff] }
 0x3a5   :  { %v861_v7 = vrot.slane %v860_v4, 4  ;;  %v914_v8 = vadd.f32 %v913_v6, %v912_v5 }
 0x3a7   :  { %v862_v9 = vadd.f32 %v861_v7, %v860_v4  ;;  %v915_v10 = vrot.slane %v914_v8, 4 }
 0x3a9   :  { %v863_v12 = vrot.slane %v862_v9, 2  ;;  %v916_v14 = vadd.f32 %v915_v10, %v914_v8 }
 0x3ab   :  { %v864_v15 = vadd.f32 %v863_v12, %v862_v9  ;;  %v917_v16 = vrot.slane %v916_v14, 2 }
 0x3ad   :  { %v865_v17 = vrot.slane %v864_v15, 1  ;;  %v918_v18 = vadd.f32 %v917_v16, %v916_v14 }
 0x3af   :  { %v866_v19 = vadd.f32 %v865_v17, %v864_v15  ;;  %v919_v20 = vrot.slane %v918_v18, 1 }
 0x3b1   :  { %v1862_v21 = vmul.f32 0.0078125, %v866_v19  ;;  %v920_v22 = vadd.f32 %v919_v20, %v918_v18 }
 0x3b3   :  { %v921_v24 = vmul.f32 0.0078125, %v920_v22  ;;  %v922_v26 = vmul.f32 %v1862_v21, %v1862_v21  ;;  %v930_v27 = vsub.f32 %v1798_v1, %v1862_v21  ;;  %v938_v28 = vsub.f32 %v816_v56, %v1862_v21 }
 0x3b4   :  { %v924_v29 = vsub.f32 %v1761_v36, %v1862_v21  ;;  %v925_v30 = vsub.f32 %v1755_v33, %v1862_v21  ;;  %v932_v32 = vsub.f32 %v1812_v13, %v1862_v21  ;;  %v933_v34 = vsub.f32 %v1810_v11, %v1862_v21 }
 0x3b5   :  { %v923_v35 = vsub.f32 %v921_v24, %v922_v26  ;;  %v926_v37 = vsub.f32 %v1771_v44, %v1862_v21  ;;  %v927_v1 = vsub.f32 %v1769_v42, %v1862_v21  ;;  %v934_v39 = vsub.f32 %v1826_v25, %v1862_v21 }
 0x3b6   :  { %v935_v36 = vsub.f32 %v1824_v23, %v1862_v21  ;;  %v928_v33 = vsub.f32 %v1784_v53, %v1862_v21  ;;  %v929_v13 = vsub.f32 %v1782_v51, %v1862_v21  ;;  %v936_v11 = vsub.f32 %v1840_v40, %v1862_v21 }
 0x3b7   :  { %v940_v41 = vadd.f32 1e-05, %v923_v35  ;;  %v937_v44 = vsub.f32 %v1838_v38, %v1862_v21  ;;  %v931_v42 = vsub.f32 %v1796_v63, %v1862_v21  ;;  %v939_v25 = vsub.f32 %v1852_v54, %v1862_v21 }
 0x3b9   :  { %1493 = vrsqrt.f32 %v940_v41 }
 0x3c3   :  { %v1897_v23 = vpop.eup %1493 }
 0x3c4   :  { %v948_v46 = vmul.f32 %v1897_v23, %v930_v27  ;;  %v956_v47 = vmul.f32 %v1897_v23, %v938_v28  ;;  %v942_v48 = vmul.f32 %v1897_v23, %v924_v29  ;;  %v943_v49 = vmul.f32 %v1897_v23, %v925_v30  ;;  %v1982_v27 = vld [vmem:[%s2133_s6 + $0x4] ss:$0 sm:$0xff] }
 0x3c5   :  { %v950_v52 = vmul.f32 %v1897_v23, %v932_v32  ;;  %v951_v55 = vmul.f32 %v1897_v23, %v933_v34  ;;  %v944_v56 = vmul.f32 %v1897_v23, %v926_v37  ;;  %v945_v57 = vmul.f32 %v1897_v23, %v927_v1 }
 0x3c6   :  { %v968_v58 = vmul.f32 %v1902_v43, %v948_v46  ;;  %v976_v59 = vmul.f32 %v1902_v43, %v956_v47  ;;  %v962_v60 = vmul.f32 %v1902_v43, %v942_v48  ;;  %v963_v61 = vmul.f32 %v1902_v43, %v943_v49 }
 0x3c7   :  { %v970_v2 = vmul.f32 %v1902_v43, %v950_v52  ;;  %v971_v3 = vmul.f32 %v1902_v43, %v951_v55  ;;  %v952_v4 = vmul.f32 %v1897_v23, %v934_v39  ;;  %v953_v5 = vmul.f32 %v1897_v23, %v935_v36 }
 0x3c8   :  { %v1938_v6 = vadd.f32 %v1913_v50, %v968_v58  ;;  %v996_v7 = vadd.f32 %v1913_v50, %v976_v59  ;;  %v982_v8 = vadd.f32 %v1913_v50, %v962_v60  ;;  %v983_v9 = vadd.f32 %v1913_v50, %v963_v61 }
 0x3c9   :  { %v990_v10 = vadd.f32 %v1913_v50, %v970_v2  ;;  %v991_v12 = vadd.f32 %v1913_v50, %v971_v3  ;;  %v964_v14 = vmul.f32 %v1902_v43, %v944_v56  ;;  %v965_v15 = vmul.f32 %v1902_v43, %v945_v57 }
 0x3ca   :  { %1004 = vst.msk [vmem:[%s2136_s9 + $0x30] sm:$0xff] %vm69_vm0, %v1938_v6  ;;  %1012 = vst.msk [vmem:[%s2136_s9 + $0x70] sm:$0xff] %vm69_vm0, %v996_v7  ;;  %v1024_v16 = vmul.f32 %v1926_v62, %v1938_v6  ;;  %v1036_v17 = vmul.f32 %v1931_v0, %v996_v7  ;;  %v1018_v18 = vmul.f32 %v1926_v62, %v982_v8 }
 0x3cb   :  { %998 = vst.msk [vmem:[%s2136_s9] sm:$0xff] %vm69_vm0, %v982_v8  ;;  %999 = vst.msk [vmem:[%s2136_s9 + $0x8] sm:$0xff] %vm69_vm0, %v983_v9  ;;  %v1019_v19 = vmul.f32 %v1926_v62, %v983_v9  ;;  %v1030_v20 = vmul.f32 %v1931_v0, %v990_v10  ;;  %v1031_v22 = vmul.f32 %v1931_v0, %v991_v12 }
 0x3cc   :  { %1006 = vst.msk [vmem:[%s2136_s9 + $0x40] sm:$0xff] %vm69_vm0, %v990_v10  ;;  %1007 = vst.msk [vmem:[%s2136_s9 + $0x48] sm:$0xff] %vm69_vm0, %v991_v12  ;;  %v1067_v24 = vmul.f32 %v982_v8, %v982_v8  ;;  %v1068_v26 = vmul.f32 %v983_v9, %v983_v9  ;;  %v1044_v28 = vadd.f32 %v1036_v17, %v1024_v16 }
 0x3cd   :  { %v972_v29 = vmul.f32 %v1902_v43, %v952_v4  ;;  %v973_v30 = vmul.f32 %v1902_v43, %v953_v5  ;;  %v984_v32 = vadd.f32 %v1913_v50, %v964_v14  ;;  %v1038_v34 = vadd.f32 %v1030_v20, %v1018_v18 }
 0x3ce   :  { %v1039_v35 = vadd.f32 %v1031_v22, %v1019_v19  ;;  %v1076_v37 = vmul.f32 %v1904_v45, %v1067_v24  ;;  %v1077_v1 = vmul.f32 %v1904_v45, %v1068_v26  ;;  %v985_v39 = vadd.f32 %v1913_v50, %v965_v15 }
 0x3cf   :  { %v992_v36 = vadd.f32 %v1913_v50, %v972_v29  ;;  %v993_v41 = vadd.f32 %v1913_v50, %v973_v30  ;;  %1000 = vst.msk [vmem:[%s2136_s9 + $0x10] sm:$0xff] %vm69_vm0, %v984_v32  ;;  %v1050_v46 = vadd.f32 %v1982_v27, %v1038_v34  ;;  %v1020_v48 = vmul.f32 %v1926_v62, %v984_v32 }
 0x3d0   :  { %v1051_v47 = vadd.f32 %v1982_v27, %v1039_v35  ;;  %v1069_v49 = vmul.f32 %v984_v32, %v984_v32  ;;  %v2000_v52 = vadd.f32 %v1982_v27, %v1044_v28  ;;  %1001 = vst.msk [vmem:[%s2136_s9 + $0x18] sm:$0xff] %vm69_vm0, %v985_v39  ;;  %v1021_v55 = vmul.f32 %v1926_v62, %v985_v39 }
 0x3d1   :  { %1008 = vst.msk [vmem:[%s2136_s9 + $0x50] sm:$0xff] %vm69_vm0, %v992_v36  ;;  %1009 = vst.msk [vmem:[%s2136_s9 + $0x58] sm:$0xff] %vm69_vm0, %v993_v41  ;;  %v1032_v56 = vmul.f32 %v1931_v0, %v992_v36  ;;  %v1033_v57 = vmul.f32 %v1931_v0, %v993_v41  ;;  %v1058_v58 = vand.u32 2147483647, %v1050_v46  ;;  %v1070_v60 = vmul.f32 %v985_v39, %v985_v39 }
 0x3d2   :  { %v1059_v59 = vand.u32 2147483647, %v1051_v47  ;;  %v1078_v61 = vmul.f32 %v1904_v45, %v1069_v49  ;;  %v946_v4 = vmul.f32 %v1897_v23, %v928_v33  ;;  %v947_v5 = vmul.f32 %v1897_v23, %v929_v13 }
 0x3d3   :  { %v1040_v2 = vadd.f32 %v1032_v56, %v1020_v48  ;;  %v1041_v3 = vadd.f32 %v1033_v57, %v1021_v55  ;;  %v1084_v7 = vsub.f32 %v1076_v37, %v1058_v58  ;;  %v1079_v9 = vmul.f32 %v1904_v45, %v1070_v60 }
 0x3d4   :  { %v1085_v8 = vsub.f32 %v1077_v1, %v1059_v59  ;;  %v954_v10 = vmul.f32 %v1897_v23, %v936_v11  ;;  %v955_v13 = vmul.f32 %v1897_v23, %v937_v44  ;;  %v966_v12 = vmul.f32 %v1902_v43, %v946_v4 }
 0x3d5   :  { %v1052_v33 = vadd.f32 %v1982_v27, %v1040_v2  ;;  %v1053_v51 = vadd.f32 %v1982_v27, %v1041_v3  ;;  %v967_v11 = vmul.f32 %v1902_v43, %v947_v5  ;;  %v949_v15 = vmul.f32 %v1897_v23, %v931_v42 }
 0x3d6   :  { %v1469_v40 = vpack.c.bf16 %v1085_v8, %v1084_v7  ;;  %v974_v14 = vmul.f32 %v1902_v43, %v954_v10  ;;  %v975_v18 = vmul.f32 %v1902_v43, %v955_v13  ;;  %v986_v38 = vadd.f32 %v1913_v50, %v966_v12 }
 0x3d7   :  { %v1060_v16 = vand.u32 2147483647, %v1052_v33  ;;  %v1061_v17 = vand.u32 2147483647, %v1053_v51  ;;  %v987_v44 = vadd.f32 %v1913_v50, %v967_v11  ;;  %v957_v63 = vmul.f32 %v1897_v23, %v939_v25 }
 0x3d8   :  { %1471 = vmatpush3.bf16.xpose.msk.msra.mxu1 %vm2033_vm3, %v1469_v40  ;;  %v994_v19 = vadd.f32 %v1913_v50, %v974_v14  ;;  %v969_v42 = vmul.f32 %v1902_v43, %v949_v15  ;;  %v995_v24 = vadd.f32 %v1913_v50, %v975_v18  ;;  %1002 = vst.msk [vmem:[%s2136_s9 + $0x20] sm:$0xff] %vm69_vm0, %v986_v38  ;;  %v1064_v30 = vand.u32 2147483647, %v2000_v52 }
 0x3d9   :  { %1472 = vmatprep.subr.bf16.mxu1 %v1535_v31  ;;  %v1086_v20 = vsub.f32 %v1078_v61, %v1060_v16  ;;  %v1087_v22 = vsub.f32 %v1079_v9, %v1061_v17  ;;  %v1022_v26 = vmul.f32 %v1926_v62, %v986_v38  ;;  %1003 = vst.msk [vmem:[%s2136_s9 + $0x28] sm:$0xff] %vm69_vm0, %v987_v44  ;;  %v1538_v3 = vmov 1.0  }
 0x3da   :  { %1010 = vst.msk [vmem:[%s2136_s9 + $0x60] sm:$0xff] %vm69_vm0, %v994_v19  ;;  %v1023_v54 = vmul.f32 %v1926_v62, %v987_v44  ;;  %v1034_v21 = vmul.f32 %v1931_v0, %v994_v19  ;;  %1011 = vst.msk [vmem:[%s2136_s9 + $0x68] sm:$0xff] %vm69_vm0, %v995_v24  ;;  %v1035_v23 = vmul.f32 %v1931_v0, %v995_v24 }
 0x3db   :  { %v1473_v25 = vpack.c.bf16 %v1087_v22, %v1086_v20  ;;  %v977_v28 = vmul.f32 %v1902_v43, %v957_v63  ;;  %v989_v29 = vadd.f32 %v1913_v50, %v969_v42  ;;  %v1071_v34 = vmul.f32 %v986_v38, %v986_v38 }
 0x3dc   :  { %v1042_v32 = vadd.f32 %v1034_v21, %v1022_v26  ;;  %v1073_v35 = vmul.f32 %v1938_v6, %v1938_v6  ;;  %v1043_v37 = vadd.f32 %v1035_v23, %v1023_v54  ;;  %v1072_v1 = vmul.f32 %v987_v44, %v987_v44 }
 0x3dd   :  { %v997_v39 = vadd.f32 %v1913_v50, %v977_v28  ;;  %1005 = vst.msk [vmem:[%s2136_s9 + $0x38] sm:$0xff] %vm69_vm0, %v989_v29  ;;  %v1025_v43 = vmul.f32 %v1926_v62, %v989_v29  ;;  %v1080_v47 = vmul.f32 %v1904_v45, %v1071_v34  ;;  %v1074_v55 = vmul.f32 %v989_v29, %v989_v29 }
 0x3de   :  { %v1054_v36 = vadd.f32 %v1982_v27, %v1042_v32  ;;  %v1082_v41 = vmul.f32 %v1904_v45, %v1073_v35  ;;  %v1055_v46 = vadd.f32 %v1982_v27, %v1043_v37  ;;  %v1081_v49 = vmul.f32 %v1904_v45, %v1072_v1 }
 0x3df   :  { %1013 = vst.msk [vmem:[%s2136_s9 + $0x78] sm:$0xff] %vm69_vm0, %v997_v39  ;;  %v1037_v50 = vmul.f32 %v1931_v0, %v997_v39  ;;  %v1083_v60 = vmul.f32 %v1904_v45, %v1074_v55  ;;  %s1267_s9 = sld [smem:[#allocation2 + $0x1]] }
 0x3e0   :  { %1475 = vmatpush3.bf16.xpose.msk.msra.mxu1 %vm2033_vm3, %v1473_v25  ;;  %v1062_v6 = vand.u32 2147483647, %v1054_v36  ;;  %v1090_v62 = vsub.f32 %v1082_v41, %v1064_v30  ;;  %v1063_v48 = vand.u32 2147483647, %v1055_v46 }
 0x3e1   :  { %1476 = vmatprep.subr.bf16.mxu1 %v1535_v31  ;;  %v1045_v52 = vadd.f32 %v1037_v50, %v1025_v43 }
 0x3e2   :  { %v1088_v56 = vsub.f32 %v1080_v47, %v1062_v6  ;;  %v1089_v57 = vsub.f32 %v1081_v49, %v1063_v48 }
 0x3e3   :  { %v1057_v58 = vadd.f32 %v1982_v27, %v1045_v52 }
 0x3e4   :  { %v1477_v59 = vpack.c.bf16 %v1089_v57, %v1088_v56 }
 0x3e5   :  { %v1065_v0 = vand.u32 2147483647, %v1057_v58  ;;  %v1093_v4 = vstv %s1267_s9 }
 0x3e7   :  { %v1091_v61 = vsub.f32 %v1083_v60, %v1065_v0 }
 0x3e8   :  { %1479 = vmatpush3.bf16.xpose.msk.msra.mxu1 %vm2033_vm3, %v1477_v59 }
 0x3e9   :  { %1480 = vmatprep.subr.bf16.mxu1 %v1535_v31  ;;  %v1481_v2 = vpack.c.bf16 %v1091_v61, %v1090_v62 }
 0x3f0   :  { %1483 = vmatpush3.bf16.xpose.msk.msra.mxu1 %vm2033_vm3, %v1481_v2 }
 0x3f7   :  { %1450 = vmatmul.mubr.msk.f32.vlgmr.msra.gmra.mrb[22].mxu1 %vm69_vm0, %v1538_v3 }
 0x4ca   :  { %v1187_v27 = vpop.f32.mrb[22].mxu1 }
 0x4cb   :  { %v1188_v45 = vadd.f32 %v1187_v27, %v1093_v4  ;;  %v1451_v5 = vpop.f32.mrb[23].mxu1 }
 0x4cd   :  { %1192 = vst.msk [vmem:[#allocation5] sm:$0x1] %vm1191_vm4, %v1188_v45 }
 0x4ce   :  { %1518 = shalt.err (!%p1515_p9)
}
 0x4cf   :  { %s1519_s12 = scalar_lea.hbm %s2135_s8, 16 }
 0x4d0   :  { %p1520_p10 = scmp.ne.s32.totalorder %s2135_s8, %s1519_s12  ;;  %p1523_p11 = scmp.lt.u32.totalorder %s1519_s12, %s2135_s8 }
 0x4d2   :  { %p1525_p12 = pnand %p1523_p11, %p1520_p10 }
 0x4d4   :  { %1528 = shalt.err (!%p1525_p12)
}
 0x4d5   :  { %1202 = dma.vmem_to_hbm [thread:$0]  %s1200_s0, 16, %s2135_s8, [#allocation3]  }
 0x4d6   :  { %1531 = dma.done.wait [#allocation3], 16  }
 0x4d7   :  { %1532 = vsyncadd [#allocation3], 4294967280 }
 0x4d8   :  { %1210 = vsyncpa [#allocation3], 1 }
 0x4d9   :  { %1211 = vsyncpa [#allocation4], 1 }

</bundles_post_ra>
